<compile_context>
chip_gen: v5e
topology: v5e:2x2
jax: 0.10.0
libtpu: 0.0.40
codegen_flags: <defaults>
</compile_context>

<pallas_src>
import functools

import jax
import jax.numpy as jnp
from jax.experimental import pallas as pl
from jax.experimental.pallas import tpu as pltpu


def _round_up(x, m):
    return ((x + m - 1) // m) * m


def ukse_kernel(h_ref, v_ref, it_ref, w_ref, b_ref, o_ref):
    # h_ref, v_ref, it_ref : (TB, Dp)  activation tiles
    # w_ref : (3*Dp, 2*Dp)  fused weights, rows = [h; v; it], cols = [W_h | W_p]
    # b_ref : (1, 2*Dp)     fused bias (f32)
    # o_ref : (TB, Dp)
    dp = h_ref.shape[1]
    wdt = w_ref.dtype

    h = h_ref[...]

    # One logical (TB, 3Dp) x (3Dp, 2Dp) matmul, K split by source so no
    # concat (host-side or in-VMEM) is ever materialized.  f32 accumulation.
    pre = (
        jnp.dot(h.astype(wdt), w_ref[0:dp, :],
                preferred_element_type=jnp.float32)
        + jnp.dot(v_ref[...].astype(wdt), w_ref[dp:2 * dp, :],
                  preferred_element_type=jnp.float32)
        + jnp.dot(it_ref[...].astype(wdt), w_ref[2 * dp:3 * dp, :],
                  preferred_element_type=jnp.float32)
        + b_ref[...]
    )

    # Lane-aligned slices (Dp is a multiple of 128).
    h_prime = jnp.tanh(pre[:, :dp])
    # sigmoid(x) == 0.5 * (tanh(0.5 * x) + 1): one EUP push instead of two.
    p = 0.5 * (jnp.tanh(0.5 * pre[:, dp:]) + 1.0)

    h32 = h.astype(jnp.float32)
    # (1 - p) * h + p * h' == h + p * (h' - h): one fewer VPU multiply.
    o_ref[...] = (h32 + p * (h_prime - h32)).astype(o_ref.dtype)


def ukse_prepare_params(w_h, b_h, w_p, b_p, *, weight_dtype=jnp.float32):
    """Fuse + transpose + pad the torch-layout params ONCE (outside hot loop).

    w_h, w_p : (D, 3D)  torch nn.Linear.weight layout (out, in)
    b_h, b_p : (D,)
    Returns (w_cat (3*Dp, 2*Dp), b_cat (1, 2*Dp), D, Dp) with Dp = round_up(D, 128).
    Row block k of w_cat acts on source k in [h, v, it]; column halves are
    [W_h | W_p].
    """
    D = w_h.shape[0]
    Dp = _round_up(D, 128)
    pad2 = ((0, Dp - D), (0, Dp - D))

    def split_pad_t(w):
        # (D, 3D) -> three (Dp, Dp) transposed blocks, one per source.
        return [jnp.pad(w[:, k * D:(k + 1) * D].T, pad2) for k in range(3)]

    wh_blk = split_pad_t(w_h)
    wp_blk = split_pad_t(w_p)
    w_cat = jnp.concatenate(
        [jnp.concatenate([wh_blk[k], wp_blk[k]], axis=1) for k in range(3)],
        axis=0,
    ).astype(weight_dtype)                                   # (3*Dp, 2*Dp)
    b_cat = jnp.concatenate(
        [jnp.pad(b_h, (0, Dp - D)), jnp.pad(b_p, (0, Dp - D))]
    ).reshape(1, 2 * Dp).astype(jnp.float32)                 # (1, 2*Dp)
    return w_cat, b_cat, D, Dp


@functools.partial(jax.jit, static_argnames=("d_h", "tb"))
def ukse_forward(h, v, it, w_cat, b_cat, *, d_h, tb=None):
    """h, v, it: (B, d_h).  w_cat/b_cat from ukse_prepare_params.  -> (B, d_h)."""
    B, D = h.shape
    assert D == d_h
    Dp = w_cat.shape[0] // 3

    # Batch tile: big enough to hit the HBM roofline (~512 rows), multiple of
    # 8 sublanes; shrink on v7x (64 MiB VMEM) via the `tb` kwarg if D is huge.
    if tb is None:
        tb = min(512, _round_up(B, 8))
    tb = _round_up(tb, 8)
    Bp = _round_up(B, tb)

    def pad_act(a):
        return jnp.pad(a, ((0, Bp - B), (0, Dp - D))) if (Bp != B or Dp != D) else a

    h_p, v_p, it_p = pad_act(h), pad_act(v), pad_act(it)

    grid = (Bp // tb,)
    act_spec = pl.BlockSpec((tb, Dp), lambda i: (i, 0))

    out = pl.pallas_call(
        ukse_kernel,
        out_shape=jax.ShapeDtypeStruct((Bp, Dp), h.dtype),
        grid_spec=pltpu.PrefetchScalarGridSpec(
            num_scalar_prefetch=0,
            grid=grid,
            in_specs=[
                act_spec,                                          # h tile
                act_spec,                                          # v tile
                act_spec,                                          # it tile
                pl.BlockSpec((3 * Dp, 2 * Dp), lambda i: (0, 0)),  # fused W (resident)
                pl.BlockSpec((1, 2 * Dp), lambda i: (0, 0)),       # fused bias
            ],
            out_specs=pl.BlockSpec((tb, Dp), lambda i: (i, 0)),
        ),
        compiler_params=pltpu.CompilerParams(
            dimension_semantics=("parallel",)),
    )(h_p, v_p, it_p, w_cat, b_cat)

    return out[:B, :D]


def _xavier_uniform(key, shape):
    # shape = (out, in) like torch nn.Linear.weight
    fan_out, fan_in = shape
    limit = (6.0 / (fan_in + fan_out)) ** 0.5
    return jax.random.uniform(key, shape, jnp.float32, -limit, limit)


if __name__ == "__main__":
    B, D = 8, 128     # batch, d_h  (3*d_h = 384)
    key = jax.random.PRNGKey(0)
    k_h, k_v, k_it, k_wh, k_bh, k_wp, k_bp = jax.random.split(key, 7)

    h = jax.random.normal(k_h, (B, D), jnp.float32)
    v = jax.random.normal(k_v, (B, D), jnp.float32)
    it = jax.random.normal(k_it, (B, D), jnp.float32)

    # Deterministic synthetic parameters (torch layout: weight (out, in)).
    w_h = _xavier_uniform(k_wh, (D, 3 * D))
    w_p = _xavier_uniform(k_wp, (D, 3 * D))
    bound = 1.0 / (3 * D) ** 0.5
    b_h = jax.random.uniform(k_bh, (D,), jnp.float32, -bound, bound)
    b_p = jax.random.uniform(k_bp, (D,), jnp.float32, -bound, bound)

    # Param fusion / transpose / padding done ONCE, outside the hot path.
    # (Use weight_dtype=jnp.bfloat16 on v6e/v7x to halve weight+activation DMA.)
    w_cat, b_cat, d_h, _ = ukse_prepare_params(w_h, b_h, w_p, b_p,
                                               weight_dtype=jnp.float32)

    out = ukse_forward(h, v, it, w_cat, b_cat, d_h=d_h)
    out = jax.block_until_ready(out)

    # Pure-JAX reference check (torch semantics).
    x = jnp.concatenate([h, v, it], axis=1)
    h_prime = jnp.tanh(x @ w_h.T + b_h)
    p = jax.nn.sigmoid(x @ w_p.T + b_p)
    ref = (1.0 - p) * h + p * h_prime
    assert jnp.allclose(out, ref, atol=1e-5, rtol=1e-5), "mismatch vs reference"

    print("KERNEL_OK")
</pallas_src>

<mosaic_0001>
module attributes {stable_mosaic.version = 11 : i64} {
  func.func @ukse_kernel(%arg0: i32, %arg1: memref<8x128xf32, #tpu.memory_space<vmem>>, %arg2: memref<8x128xf32, #tpu.memory_space<vmem>>, %arg3: memref<8x128xf32, #tpu.memory_space<vmem>>, %arg4: memref<384x256xf32, #tpu.memory_space<vmem>>, %arg5: memref<1x256xf32, #tpu.memory_space<vmem>>, %arg6: memref<8x128xf32, #tpu.memory_space<vmem>>) attributes {dimension_semantics = [#tpu.dimension_semantics<parallel>], iteration_bounds = array<i64: 1>, scalar_prefetch = 0 : i64, scratch_operands = 0 : i64, tpu.core_type = #tpu.core_type<tc>, window_params = [{transform_indices = @transform_0, window_bounds = array<i64: 8, 128>}, {transform_indices = @transform_1, window_bounds = array<i64: 8, 128>}, {transform_indices = @transform_2, window_bounds = array<i64: 8, 128>}, {pipeline_mode = #tpu.pipeline_mode<synchronous>, transform_indices = @transform_3, window_bounds = array<i64: 384, 256>}, {pipeline_mode = #tpu.pipeline_mode<synchronous>, transform_indices = @transform_4, window_bounds = array<i64: 1, 256>}, {transform_indices = @transform_5, window_bounds = array<i64: 8, 128>}]} {
    %c0 = arith.constant 0 : index
    %c0_0 = arith.constant 0 : index
    %0 = vector.load %arg1[%c0, %c0_0] : memref<8x128xf32, #tpu.memory_space<vmem>>, vector<8x128xf32>
    %c0_1 = arith.constant 0 : index
    %c0_2 = arith.constant 0 : index
    %1 = vector.load %arg4[%c0_1, %c0_2] : memref<384x256xf32, #tpu.memory_space<vmem>>, vector<128x256xf32>
    %cst = arith.constant dense<0.000000e+00> : vector<8x256xf32>
    %2 = tpu.matmul %0, %1, %cst {dimension_numbers = #tpu.dot_dimension_numbers<[1], [0], [0], [1], [0, 0, 1, 1], [], []>} : vector<8x128xf32>, vector<128x256xf32>, vector<8x256xf32> -> vector<8x256xf32>
    %c0_3 = arith.constant 0 : index
    %c0_4 = arith.constant 0 : index
    %3 = vector.load %arg2[%c0_3, %c0_4] : memref<8x128xf32, #tpu.memory_space<vmem>>, vector<8x128xf32>
    %c128 = arith.constant 128 : index
    %c0_5 = arith.constant 0 : index
    %4 = vector.load %arg4[%c128, %c0_5] : memref<384x256xf32, #tpu.memory_space<vmem>>, vector<128x256xf32>
    %cst_6 = arith.constant dense<0.000000e+00> : vector<8x256xf32>
    %5 = tpu.matmul %3, %4, %cst_6 {dimension_numbers = #tpu.dot_dimension_numbers<[1], [0], [0], [1], [0, 0, 1, 1], [], []>} : vector<8x128xf32>, vector<128x256xf32>, vector<8x256xf32> -> vector<8x256xf32>
    %6 = arith.addf %2, %5 : vector<8x256xf32>
    %c0_7 = arith.constant 0 : index
    %c0_8 = arith.constant 0 : index
    %7 = vector.load %arg3[%c0_7, %c0_8] : memref<8x128xf32, #tpu.memory_space<vmem>>, vector<8x128xf32>
    %c256 = arith.constant 256 : index
    %c0_9 = arith.constant 0 : index
    %8 = vector.load %arg4[%c256, %c0_9] : memref<384x256xf32, #tpu.memory_space<vmem>>, vector<128x256xf32>
    %cst_10 = arith.constant dense<0.000000e+00> : vector<8x256xf32>
    %9 = tpu.matmul %7, %8, %cst_10 {dimension_numbers = #tpu.dot_dimension_numbers<[1], [0], [0], [1], [0, 0, 1, 1], [], []>} : vector<8x128xf32>, vector<128x256xf32>, vector<8x256xf32> -> vector<8x256xf32>
    %10 = arith.addf %6, %9 : vector<8x256xf32>
    %c0_11 = arith.constant 0 : index
    %c0_12 = arith.constant 0 : index
    %11 = vector.load %arg5[%c0_11, %c0_12] : memref<1x256xf32, #tpu.memory_space<vmem>>, vector<1x256xf32>
    %12 = vector.broadcast %11 : vector<1x256xf32> to vector<8x256xf32>
    %13 = arith.addf %10, %12 : vector<8x256xf32>
    %14 = vector.extract_strided_slice %13 {offsets = [0, 0], sizes = [8, 128], strides = [1, 1]} : vector<8x256xf32> to vector<8x128xf32>
    %15 = math.tanh %14 : vector<8x128xf32>
    %16 = vector.extract_strided_slice %13 {offsets = [0, 128], sizes = [8, 128], strides = [1, 1]} : vector<8x256xf32> to vector<8x128xf32>
    %cst_13 = arith.constant 5.000000e-01 : f32
    %17 = vector.broadcast %cst_13 : f32 to vector<8x128xf32>
    %18 = arith.mulf %17, %16 : vector<8x128xf32>
    %19 = math.tanh %18 : vector<8x128xf32>
    %cst_14 = arith.constant 1.000000e+00 : f32
    %20 = vector.broadcast %cst_14 : f32 to vector<8x128xf32>
    %21 = arith.addf %19, %20 : vector<8x128xf32>
    %cst_15 = arith.constant 5.000000e-01 : f32
    %22 = vector.broadcast %cst_15 : f32 to vector<8x128xf32>
    %23 = arith.mulf %22, %21 : vector<8x128xf32>
    %24 = arith.subf %15, %0 : vector<8x128xf32>
    %25 = arith.mulf %23, %24 : vector<8x128xf32>
    %26 = arith.addf %0, %25 : vector<8x128xf32>
    %c0_16 = arith.constant 0 : index
    %c0_17 = arith.constant 0 : index
    %27 = vector.load %arg6[%c0_16, %c0_17] : memref<8x128xf32, #tpu.memory_space<vmem>>, vector<8x128xf32>
    tpu.vector_store %arg6[%c0_16, %c0_17], %26 {strides = array<i32>} : memref<8x128xf32, #tpu.memory_space<vmem>>, vector<8x128xf32>,
    return
  }
  func.func @transform_0(%arg0: i32) -> (i32, i32) {
    %c0_i32 = arith.constant 0 : i32
    %c0_i32_0 = arith.constant 0 : i32
    return %arg0, %c0_i32 : i32, i32
  }
  func.func @transform_1(%arg0: i32) -> (i32, i32) {
    %c0_i32 = arith.constant 0 : i32
    %c0_i32_0 = arith.constant 0 : i32
    return %arg0, %c0_i32 : i32, i32
  }
  func.func @transform_2(%arg0: i32) -> (i32, i32) {
    %c0_i32 = arith.constant 0 : i32
    %c0_i32_0 = arith.constant 0 : i32
    return %arg0, %c0_i32 : i32, i32
  }
  func.func @transform_3(%arg0: i32) -> (i32, i32) {
    %c0_i32 = arith.constant 0 : i32
    %c0_i32_0 = arith.constant 0 : i32
    %c0_i32_1 = arith.constant 0 : i32
    return %c0_i32, %c0_i32_0 : i32, i32
  }
  func.func @transform_4(%arg0: i32) -> (i32, i32) {
    %c0_i32 = arith.constant 0 : i32
    %c0_i32_0 = arith.constant 0 : i32
    %c0_i32_1 = arith.constant 0 : i32
    return %c0_i32, %c0_i32_0 : i32, i32
  }
  func.func @transform_5(%arg0: i32) -> (i32, i32) {
    %c0_i32 = arith.constant 0 : i32
    %c0_i32_0 = arith.constant 0 : i32
    return %arg0, %c0_i32 : i32, i32
  }
}

</mosaic_0001>

<bundles_post_ra>
// kernel: ukse_forward.1
= control target key start
LH: loop header
LB: loop body
LE: loop exit
PB: predicated region body
PF: predicated region fallthrough
CT: control target
= control target key end

     0   :  { %10 = vsyncpa [#allocation3], 0  ;;  %s535_s0 = inlined_call_operand.hbm [shape: f32[8,128], index: 0, kind: input, shape index: {}]   ;;  %s536_s1 = inlined_call_operand.hbm [shape: f32[8,128], index: 1, kind: input, shape index: {}]   ;;  %s537_s2 = inlined_call_operand.hbm [shape: f32[8,128], index: 2, kind: input, shape index: {}]   ;;  %s538_s3 = inlined_call_operand.hbm [shape: f32[384,256], index: 3, kind: input, shape index: {}]   ;;  %s539_s4 = inlined_call_operand.vmem [shape: f32[1,256], index: 4, kind: input, shape index: {}]   ;;  %s540_s5 = inlined_call_operand.hbm [shape: f32[8,128], index: 5, kind: output, shape index: {}]  }
   0x1   :  { %11 = vsyncpa [#allocation6], 0 }
   0x2   :  { %12 = vsyncpa [#allocation9], 0  ;;  %s30_s20 = sshll.u32 %s536_s1, 4  ;;  %s31_s20 = int_to_ptr.hbm [resolvable:$true] %s30_s20 }
   0x3   :  { %13 = vsyncpa [#allocation4], 0  ;;  %s474_s21 = smov [#allocation5]   ;;  %s19_s25 = sshll.u32 %s535_s0, 4  ;;  %s20_s25 = int_to_ptr.hbm [resolvable:$true] %s19_s25 }
   0x4   :  { %s32_s22 = sshll.u32 %s474_s21, 4  ;;  %s475_s26 = smov [#allocation2]   ;;  %s33_s22 = int_to_ptr.vmem [resolvable:$true] %s32_s22 }
   0x5   :  { %35 = dma.hbm_to_vmem [thread:$0]  %s31_s20, 128, %s33_s22, [#allocation6]  }
   0x6   :  { %s21_s27 = sshll.u32 %s475_s26, 4  ;;  %s41_s30 = sshll.u32 %s537_s2, 4  ;;  %s22_s27 = int_to_ptr.vmem [resolvable:$true] %s21_s27  ;;  %s42_s30 = int_to_ptr.hbm [resolvable:$true] %s41_s30 }
   0x7   :  { %24 = dma.hbm_to_vmem [thread:$0]  %s20_s25, 128, %s22_s27, [#allocation3]  }
   0x8   :  { %s51_s7 = sshll.u32 %s538_s3, 4  ;;  %s476_s8 = smov [#allocation7]   ;;  %s52_s7 = int_to_ptr.hbm [resolvable:$true] %s51_s7 }
   0x9   :  { %s43_s9 = sshll.u32 %s476_s8, 4  ;;  %s477_s0 = smov [#allocation8]   ;;  %s44_s9 = int_to_ptr.vmem [resolvable:$true] %s43_s9 }
   0xa   :  { %46 = dma.hbm_to_vmem [thread:$0]  %s42_s30, 128, %s44_s9, [#allocation6]  }
   0xb   :  { %s53_s10 = sshll.u32 %s477_s0, 4  ;;  %s478_s11 = smov 256   ;;  %s54_s10 = int_to_ptr.vmem [resolvable:$true] %s53_s10 }
   0xc   :  { %s479_s12 = smov 16  }
   0xd   :  { %59 = dma.hbm_to_vmem [thread:$0]  %s52_s7, 12288, %s54_s10, [#allocation9], %s478_s11, %s478_s11, %s479_s12  }
   0xe   :  { %466 = dma.done.wait [#allocation3], 128  }
   0xf   :  { %467 = vsyncadd [#allocation3], 4294967168 }
  0x10   :  { %468 = dma.done.wait [#allocation6], 256  }
  0x11   :  { %469 = vsyncadd [#allocation6], 4294967040 }
  0x12   :  { %470 = dma.done.wait [#allocation9], 12288  }
  0x13   :  { %471 = vsyncadd [#allocation9], 4294955008  ;;  %v142_v0 = vld [vmem:[#allocation8 + $0x1f0] sm:$0xff]  ;;  %v143_v1 = vld [vmem:[#allocation8 + $0x1f8] sm:$0xff]  ;;  %s323_s16 = sshll.u32 %s540_s5, 4  ;;  %s324_s16 = int_to_ptr.hbm [resolvable:$true] %s323_s16 }
  0x14   :  { %v140_v2 = vld [vmem:[#allocation8 + $0x1e0] sm:$0xff]  ;;  %144 = vmatpush.msra.mxu0 %v142_v0  ;;  %164 = vmatpush.msra.mxu1 %v143_v1  ;;  %v141_v3 = vld [vmem:[#allocation8 + $0x1e8] sm:$0xff]  ;;  %v138_v4 = vld [vmem:[#allocation8 + $0x1d0] sm:$0xff] }
  0x15   :  { %v139_v5 = vld [vmem:[#allocation8 + $0x1d8] sm:$0xff]  ;;  %v136_v6 = vld [vmem:[#allocation8 + $0x1c0] sm:$0xff]  ;;  %v137_v7 = vld [vmem:[#allocation8 + $0x1c8] sm:$0xff] }
  0x16   :  { %145 = vmatpush.msra.mxu0 %v140_v2  ;;  %165 = vmatpush.msra.mxu1 %v141_v3  ;;  %v134_v8 = vld [vmem:[#allocation8 + $0x1b0] sm:$0xff]  ;;  %v135_v9 = vld [vmem:[#allocation8 + $0x1b8] sm:$0xff]  ;;  %v108_v11 = vld [vmem:[#allocation8 + $0xe8] sm:$0xff] }
  0x17   :  { %v110_v10 = vld [vmem:[#allocation8 + $0xf8] sm:$0xff]  ;;  %v132_v12 = vld [vmem:[#allocation8 + $0x1a0] sm:$0xff]  ;;  %v133_v13 = vld [vmem:[#allocation8 + $0x1a8] sm:$0xff] }
  0x18   :  { %146 = vmatpush.msra.mxu0 %v138_v4  ;;  %166 = vmatpush.msra.mxu1 %v139_v5  ;;  %v109_v14 = vld [vmem:[#allocation8 + $0xf0] sm:$0xff]  ;;  %v106_v15 = vld [vmem:[#allocation8 + $0xd8] sm:$0xff]  ;;  %v107_v16 = vld [vmem:[#allocation8 + $0xe0] sm:$0xff] }
  0x19   :  { %204 = vmatpush.msra.mxu3 %v110_v10  ;;  %v130_v17 = vld [vmem:[#allocation8 + $0x190] sm:$0xff]  ;;  %v131_v18 = vld [vmem:[#allocation8 + $0x198] sm:$0xff]  ;;  %184 = vmatpush.msra.mxu2 %v109_v14  ;;  %v104_v19 = vld [vmem:[#allocation8 + $0xc8] sm:$0xff] }
  0x1a   :  { %147 = vmatpush.msra.mxu0 %v136_v6  ;;  %167 = vmatpush.msra.mxu1 %v137_v7  ;;  %v105_v20 = vld [vmem:[#allocation8 + $0xd0] sm:$0xff]  ;;  %v128_v21 = vld [vmem:[#allocation8 + $0x180] sm:$0xff]  ;;  %v129_v22 = vld [vmem:[#allocation8 + $0x188] sm:$0xff] }
  0x1b   :  { %205 = vmatpush.msra.mxu3 %v108_v11  ;;  %185 = vmatpush.msra.mxu2 %v107_v16  ;;  %v102_v23 = vld [vmem:[#allocation8 + $0xb8] sm:$0xff]  ;;  %v103_v24 = vld [vmem:[#allocation8 + $0xc0] sm:$0xff]  ;;  %v126_v25 = vld [vmem:[#allocation8 + $0x170] sm:$0xff] }
  0x1c   :  { %148 = vmatpush.msra.mxu0 %v134_v8  ;;  %168 = vmatpush.msra.mxu1 %v135_v9  ;;  %v127_v26 = vld [vmem:[#allocation8 + $0x178] sm:$0xff]  ;;  %v100_v27 = vld [vmem:[#allocation8 + $0xa8] sm:$0xff]  ;;  %v101_v28 = vld [vmem:[#allocation8 + $0xb0] sm:$0xff] }
  0x1d   :  { %206 = vmatpush.msra.mxu3 %v106_v15  ;;  %186 = vmatpush.msra.mxu2 %v105_v20  ;;  %v124_v29 = vld [vmem:[#allocation8 + $0x160] sm:$0xff]  ;;  %v125_v30 = vld [vmem:[#allocation8 + $0x168] sm:$0xff]  ;;  %v98_v31 = vld [vmem:[#allocation8 + $0x98] sm:$0xff] }
  0x1e   :  { %149 = vmatpush.msra.mxu0 %v132_v12  ;;  %169 = vmatpush.msra.mxu1 %v133_v13  ;;  %v99_v32 = vld [vmem:[#allocation8 + $0xa0] sm:$0xff]  ;;  %v122_v33 = vld [vmem:[#allocation8 + $0x150] sm:$0xff]  ;;  %v123_v34 = vld [vmem:[#allocation8 + $0x158] sm:$0xff] }
  0x1f   :  { %207 = vmatpush.msra.mxu3 %v104_v19  ;;  %187 = vmatpush.msra.mxu2 %v103_v24  ;;  %v96_v35 = vld [vmem:[#allocation8 + $0x88] sm:$0xff]  ;;  %v97_v36 = vld [vmem:[#allocation8 + $0x90] sm:$0xff]  ;;  %v120_v37 = vld [vmem:[#allocation8 + $0x140] sm:$0xff] }
  0x20   :  { %150 = vmatpush.msra.mxu0 %v130_v17  ;;  %170 = vmatpush.msra.mxu1 %v131_v18  ;;  %v121_v38 = vld [vmem:[#allocation8 + $0x148] sm:$0xff]  ;;  %v94_v39 = vld [vmem:[#allocation8 + $0x78] sm:$0xff]  ;;  %v95_v40 = vld [vmem:[#allocation8 + $0x80] sm:$0xff] }
  0x21   :  { %208 = vmatpush.msra.mxu3 %v102_v23  ;;  %188 = vmatpush.msra.mxu2 %v101_v28  ;;  %v118_v41 = vld [vmem:[#allocation8 + $0x130] sm:$0xff]  ;;  %v119_v42 = vld [vmem:[#allocation8 + $0x138] sm:$0xff]  ;;  %v92_v43 = vld [vmem:[#allocation8 + $0x68] sm:$0xff] }
  0x22   :  { %151 = vmatpush.msra.mxu0 %v128_v21  ;;  %171 = vmatpush.msra.mxu1 %v129_v22  ;;  %v93_v44 = vld [vmem:[#allocation8 + $0x70] sm:$0xff]  ;;  %v116_v45 = vld [vmem:[#allocation8 + $0x120] sm:$0xff]  ;;  %v117_v46 = vld [vmem:[#allocation8 + $0x128] sm:$0xff] }
  0x23   :  { %209 = vmatpush.msra.mxu3 %v100_v27  ;;  %189 = vmatpush.msra.mxu2 %v99_v32  ;;  %v90_v47 = vld [vmem:[#allocation8 + $0x58] sm:$0xff]  ;;  %v91_v48 = vld [vmem:[#allocation8 + $0x60] sm:$0xff]  ;;  %v114_v49 = vld [vmem:[#allocation8 + $0x110] sm:$0xff] }
  0x24   :  { %152 = vmatpush.msra.mxu0 %v126_v25  ;;  %172 = vmatpush.msra.mxu1 %v127_v26  ;;  %v115_v50 = vld [vmem:[#allocation8 + $0x118] sm:$0xff]  ;;  %v88_v51 = vld [vmem:[#allocation8 + $0x48] sm:$0xff]  ;;  %v89_v52 = vld [vmem:[#allocation8 + $0x50] sm:$0xff] }
  0x25   :  { %210 = vmatpush.msra.mxu3 %v98_v31  ;;  %190 = vmatpush.msra.mxu2 %v97_v36  ;;  %v112_v53 = vld [vmem:[#allocation8 + $0x100] sm:$0xff]  ;;  %v113_v54 = vld [vmem:[#allocation8 + $0x108] sm:$0xff]  ;;  %v255_v55 = vld [vmem:[#allocation8 + $0x2f0] sm:$0xff] }
  0x26   :  { %153 = vmatpush.msra.mxu0 %v124_v29  ;;  %173 = vmatpush.msra.mxu1 %v125_v30  ;;  %v256_v56 = vld [vmem:[#allocation8 + $0x2f8] sm:$0xff]  ;;  %v87_v58 = vld [vmem:[#allocation8 + $0x40] sm:$0xff]  ;;  %v254_v60 = vld [vmem:[#allocation8 + $0x2e8] sm:$0xff] }
  0x27   :  { %211 = vmatpush.msra.mxu3 %v96_v35  ;;  %191 = vmatpush.msra.mxu2 %v95_v40  ;;  %v86_v57 = vld [vmem:[#allocation8 + $0x38] sm:$0xff]  ;;  %v253_v59 = vld [vmem:[#allocation8 + $0x2e0] sm:$0xff]  ;;  %v84_v61 = vld [vmem:[#allocation8 + $0x28] sm:$0xff] }
  0x28   :  { %154 = vmatpush.msra.mxu0 %v122_v33  ;;  %174 = vmatpush.msra.mxu1 %v123_v34  ;;  %v85_v62 = vld [vmem:[#allocation8 + $0x30] sm:$0xff]  ;;  %v252_v0 = vld [vmem:[#allocation8 + $0x2d8] sm:$0xff]  ;;  %v83_v2 = vld [vmem:[#allocation8 + $0x20] sm:$0xff] }
  0x29   :  { %212 = vmatpush.msra.mxu3 %v94_v39  ;;  %192 = vmatpush.msra.mxu2 %v93_v44  ;;  %v251_v63 = vld [vmem:[#allocation8 + $0x2d0] sm:$0xff]  ;;  %v82_v1 = vld [vmem:[#allocation8 + $0x18] sm:$0xff]  ;;  %v249_v3 = vld [vmem:[#allocation8 + $0x2c0] sm:$0xff] }
  0x2a   :  { %155 = vmatpush.msra.mxu0 %v120_v37  ;;  %175 = vmatpush.msra.mxu1 %v121_v38  ;;  %v250_v4 = vld [vmem:[#allocation8 + $0x2c8] sm:$0xff]  ;;  %v81_v6 = vld [vmem:[#allocation8 + $0x10] sm:$0xff]  ;;  %v248_v8 = vld [vmem:[#allocation8 + $0x2b8] sm:$0xff] }
  0x2b   :  { %213 = vmatpush.msra.mxu3 %v92_v43  ;;  %193 = vmatpush.msra.mxu2 %v91_v48  ;;  %v80_v5 = vld [vmem:[#allocation8 + $0x8] sm:$0xff]  ;;  %v247_v7 = vld [vmem:[#allocation8 + $0x2b0] sm:$0xff]  ;;  %v79_v10 = vld [vmem:[#allocation8] sm:$0xff] }
  0x2c   :  { %156 = vmatpush.msra.mxu0 %v118_v41  ;;  %176 = vmatpush.msra.mxu1 %v119_v42  ;;  %v523_v9 = vld [vmem:[#allocation2] sm:$0xff]  ;;  %v245_v11 = vld [vmem:[#allocation8 + $0x2a0] sm:$0xff]  ;;  %v111_v13 = vld [vmem:[#allocation5] sm:$0xff] }
  0x2d   :  { %214 = vmatpush.msra.mxu3 %v90_v47  ;;  %194 = vmatpush.msra.mxu2 %v89_v52  ;;  %v246_v12 = vld [vmem:[#allocation8 + $0x2a8] sm:$0xff]  ;;  %v243_v14 = vld [vmem:[#allocation8 + $0x290] sm:$0xff]  ;;  %v244_v15 = vld [vmem:[#allocation8 + $0x298] sm:$0xff] }
  0x2e   :  { %157 = vmatpush.msra.mxu0 %v116_v45  ;;  %177 = vmatpush.msra.mxu1 %v117_v46  ;;  %v241_v16 = vld [vmem:[#allocation8 + $0x280] sm:$0xff]  ;;  %v242_v17 = vld [vmem:[#allocation8 + $0x288] sm:$0xff]  ;;  %v239_v18 = vld [vmem:[#allocation8 + $0x270] sm:$0xff] }
  0x2f   :  { %215 = vmatpush.msra.mxu3 %v88_v51  ;;  %195 = vmatpush.msra.mxu2 %v87_v58  ;;  %v240_v19 = vld [vmem:[#allocation8 + $0x278] sm:$0xff]  ;;  %v237_v20 = vld [vmem:[#allocation8 + $0x260] sm:$0xff]  ;;  %v238_v21 = vld [vmem:[#allocation8 + $0x268] sm:$0xff] }
  0x30   :  { %158 = vmatpush.msra.mxu0 %v114_v49  ;;  %178 = vmatpush.msra.mxu1 %v115_v50  ;;  %v235_v22 = vld [vmem:[#allocation8 + $0x250] sm:$0xff]  ;;  %v236_v23 = vld [vmem:[#allocation8 + $0x258] sm:$0xff]  ;;  %v233_v24 = vld [vmem:[#allocation8 + $0x240] sm:$0xff] }
  0x31   :  { %216 = vmatpush.msra.mxu3 %v86_v57  ;;  %196 = vmatpush.msra.mxu2 %v85_v62  ;;  %v234_v25 = vld [vmem:[#allocation8 + $0x248] sm:$0xff]  ;;  %v231_v26 = vld [vmem:[#allocation8 + $0x230] sm:$0xff]  ;;  %v232_v27 = vld [vmem:[#allocation8 + $0x238] sm:$0xff] }
  0x32   :  { %159 = vmatpush.msra.mxu0 %v112_v53  ;;  %179 = vmatpush.msra.mxu1 %v113_v54  ;;  %v229_v28 = vld [vmem:[#allocation8 + $0x220] sm:$0xff]  ;;  %v230_v29 = vld [vmem:[#allocation8 + $0x228] sm:$0xff]  ;;  %v227_v30 = vld [vmem:[#allocation8 + $0x210] sm:$0xff] }
  0x33   :  { %217 = vmatpush.msra.mxu3 %v84_v61  ;;  %197 = vmatpush.msra.mxu2 %v83_v2  ;;  %v228_v31 = vld [vmem:[#allocation8 + $0x218] sm:$0xff]  ;;  %v225_v32 = vld [vmem:[#allocation8 + $0x200] sm:$0xff]  ;;  %v226_v33 = vld [vmem:[#allocation8 + $0x208] sm:$0xff] }
  0x34   :  { %257 = vmatpush.msrb.mxu0 %v255_v55  ;;  %277 = vmatpush.msrb.mxu1 %v256_v56  ;;  %v224_v34 = vld [vmem:[#allocation7] sm:$0xff]  ;;  %v299_v39 = vld [vmem:[%s539_s4] sm:$0x3]  ;;  %s480_s4 = smov [#allocation10]  }
  0x35   :  { %218 = vmatpush.msra.mxu3 %v82_v1  ;;  %198 = vmatpush.msra.mxu2 %v81_v6  ;;  %v301_v42 = vperm.slane %v299_v39, 0  ;;  %v302_v43 = vperm.slane %v299_v39, 1  ;;  %s321_s13 = sshll.u32 %s480_s4, 4  ;;  %s322_s13 = int_to_ptr.vmem [resolvable:$true] %s321_s13 }
  0x36   :  { %258 = vmatpush.msrb.mxu0 %v253_v59  ;;  %278 = vmatpush.msrb.mxu1 %v254_v60 }
  0x37   :  { %219 = vmatpush.msra.mxu3 %v80_v5  ;;  %199 = vmatpush.msra.mxu2 %v79_v10 }
  0x38   :  { %259 = vmatpush.msrb.mxu0 %v251_v63  ;;  %279 = vmatpush.msrb.mxu1 %v252_v0 }
  0x39   :  { %220 = vmatmul.f32.vlgmr.msra.gmra.mxu3 %v523_v9  ;;  %200 = vmatmul.f32.vlgmr.msra.gmra.mxu2 %v523_v9 }
  0x3a   :  { %260 = vmatpush.msrb.mxu0 %v249_v3  ;;  %280 = vmatpush.msrb.mxu1 %v250_v4 }
  0x3b   :  { %160 = vmatmul.f32.vlgmr.msra.gmra.mxu0 %v111_v13  ;;  %180 = vmatmul.f32.vlgmr.msra.gmra.mxu1 %v111_v13 }
  0x3c   :  { %261 = vmatpush.msrb.mxu0 %v247_v7  ;;  %281 = vmatpush.msrb.mxu1 %v248_v8 }
  0x3e   :  { %262 = vmatpush.msrb.mxu0 %v245_v11  ;;  %282 = vmatpush.msrb.mxu1 %v246_v12 }
  0x40   :  { %263 = vmatpush.msrb.mxu0 %v243_v14  ;;  %283 = vmatpush.msrb.mxu1 %v244_v15 }
  0x42   :  { %264 = vmatpush.msrb.mxu0 %v241_v16  ;;  %284 = vmatpush.msrb.mxu1 %v242_v17 }
  0x44   :  { %265 = vmatpush.msrb.mxu0 %v239_v18  ;;  %285 = vmatpush.msrb.mxu1 %v240_v19 }
  0x46   :  { %266 = vmatpush.msrb.mxu0 %v237_v20  ;;  %286 = vmatpush.msrb.mxu1 %v238_v21 }
  0x48   :  { %267 = vmatpush.msrb.mxu0 %v235_v22  ;;  %287 = vmatpush.msrb.mxu1 %v236_v23 }
  0x4a   :  { %268 = vmatpush.msrb.mxu0 %v233_v24  ;;  %288 = vmatpush.msrb.mxu1 %v234_v25 }
  0x4c   :  { %269 = vmatpush.msrb.mxu0 %v231_v26  ;;  %289 = vmatpush.msrb.mxu1 %v232_v27 }
  0x4e   :  { %270 = vmatpush.msrb.mxu0 %v229_v28  ;;  %290 = vmatpush.msrb.mxu1 %v230_v29 }
  0x50   :  { %271 = vmatpush.msrb.mxu0 %v227_v30  ;;  %291 = vmatpush.msrb.mxu1 %v228_v31 }
  0x52   :  { %272 = vmatpush.msrb.mxu0 %v225_v32  ;;  %292 = vmatpush.msrb.mxu1 %v226_v33 }
  0x53   :  { %273 = vmatmul.f32.vlgmr.msrb.gmra.mxu0 %v224_v34  ;;  %293 = vmatmul.f32.vlgmr.msrb.gmra.mxu1 %v224_v34 }
  0xb8   :  { %v161_v35 = vpop.f32.mrf.mxu0  ;;  %v181_v36 = vpop.f32.mrf.mxu1 }
  0xbc   :  { %v221_v37 = vpop.f32.mrf.mxu3  ;;  %v201_v38 = vpop.f32.mrf.mxu2 }
  0xbd   :  { %v222_v40 = vadd.f32 %v221_v37, %v181_v36  ;;  %v202_v41 = vadd.f32 %v201_v38, %v161_v35 }
  0xd0   :  { %v274_v44 = vpop.f32.mrf.mxu0  ;;  %v294_v45 = vpop.f32.mrf.mxu1 }
  0xd1   :  { %v297_v46 = vadd.f32 %v274_v44, %v202_v41  ;;  %v298_v47 = vadd.f32 %v294_v45, %v222_v40 }
  0xd3   :  { %v305_v48 = vadd.f32 %v301_v42, %v297_v46  ;;  %v306_v49 = vadd.f32 %v302_v43, %v298_v47 }
  0xd5   :  { %v308_v50 = vmul.f32 0.5, %v306_v49  ;;  %342 = vtanh.f32 %v305_v48 }
  0xd7   :  { %344 = vtanh.f32 %v308_v50 }
  0xdb   :  { %v343_v51 = vpop.eup %342 }
  0xdc   :  { %v312_v55 = vsub.f32 %v343_v51, %v523_v9 }
  0xdd   :  { %v345_v52 = vpop.eup %344 }
  0xde   :  { %v310_v53 = vadd.f32 1.0, %v345_v52 }
  0xe0   :  { %v311_v54 = vmul.f32 0.5, %v310_v53 }
  0xe2   :  { %v313_v56 = vmul.f32 %v312_v55, %v311_v54 }
  0xe4   :  { %v314_v57 = vadd.f32 %v313_v56, %v523_v9 }
  0xe6   :  { %315 = vst [vmem:[#allocation10] sm:$0xff] %v314_v57 }
  0xe7   :  { %326 = dma.vmem_to_hbm [thread:$0]  %s322_s13, 128, %s324_s16, [#allocation4]  }
  0xe8   :  { %472 = dma.done.wait [#allocation4], 128  }
  0xe9   :  { %473 = vsyncadd [#allocation4], 4294967168 }
  0xea   :  { %331 = vsyncpa [#allocation3], 1 }
  0xeb   :  { %332 = vsyncpa [#allocation6], 1 }
  0xec   :  { %333 = vsyncpa [#allocation9], 1 }
  0xed   :  { %334 = vsyncpa [#allocation4], 1 }

</bundles_post_ra>
